<compile_context>
chip_gen: v6e
topology: v6e:2x2x1
jax: 0.10.0
libtpu: 0.0.40
codegen_flags: <defaults>
</compile_context>

<pallas_src>
import functools

import jax
import jax.numpy as jnp
import numpy as np
from jax.experimental import pallas as pl
from jax.experimental.pallas import tpu as pltpu


def unet_block_kernel(xf_ref, te_ref, w1b_ref, b1_ref, w2b_ref, b2_ref,
                      o_ref, hpad_ref, *, H, W, cout):
    # xf_ref:   (1, H+2, (W+2)*Cin)   zero-padded input, flat lane-dense layout
    # te_ref:   (1, 1, W*Cout)        relu(t_emb @ Wt + bt) tiled across W (wrapper)
    # w1b_ref:  (3, (W+2)*Cin,  W*Cout)  banded conv1 weights (one band per ky)
    # w2b_ref:  (3, (W+2)*Cout, W*Cout)  banded conv2 weights
    # b1_ref/b2_ref: (1, W*Cout)      conv biases tiled across W
    # o_ref:    (1, H, W*Cout)        lane-dense output slab (128 lanes)
    # hpad_ref: (H+2, (W+2)*Cout)     VMEM scratch: zero-padded hidden for conv2
    WC = W * cout

    # conv1: 3 banded matmuls (one per ky); kx taps live inside the banded weight.
    acc = jnp.zeros((H, WC), jnp.float32)
    for ky in range(3):
        acc = acc + jnp.dot(xf_ref[0, ky:ky + H, :], w1b_ref[ky],
                            preferred_element_type=jnp.float32)
    h = jnp.maximum(acc + b1_ref[...], 0.0) + te_ref[0]   # (H, W*Cout)

    # zero-pad hidden for conv2 (flat layout: full zero is only a handful of vregs).
    hpad_ref[...] = jnp.zeros(hpad_ref.shape, hpad_ref.dtype)
    hpad_ref[1:1 + H, cout:cout + WC] = h

    # conv2: 3 banded matmuls, then bias + ReLU, stored as a dense (H, 128) slab.
    acc2 = jnp.zeros((H, WC), jnp.float32)
    for ky in range(3):
        acc2 = acc2 + jnp.dot(hpad_ref[ky:ky + H, :], w2b_ref[ky],
                              preferred_element_type=jnp.float32)
    out = jnp.maximum(acc2 + b2_ref[...], 0.0)
    o_ref[...] = out.reshape(1, H, WC)


def _banded_conv_weights(w, width):
    """w: (3, 3, Cin, Cout) HWIO -> (3, (width+2)*Cin, width*Cout) block-banded.

    band[ky, (x+kx)*Cin + c, x*Cout + o] = w[ky, kx, c, o], zeros elsewhere, so that
    (padded_row_slab @ band[ky]) summed over ky equals the 'same' 3x3 convolution.
    """
    kh, kw, cin, cout = w.shape
    bands = []
    for ky in range(kh):
        b = jnp.zeros(((width + 2) * cin, width * cout), w.dtype)
        for kx in range(kw):
            sel = jnp.zeros((width + 2, width), w.dtype)
            sel = sel.at[jnp.arange(width) + kx, jnp.arange(width)].set(1.0)
            b = b + jnp.einsum('pq,io->piqo', sel, w[ky, kx]).reshape(
                (width + 2) * cin, width * cout)
        bands.append(b)
    return jnp.stack(bands, axis=0)


def unet_block(x, t_emb, params):
    """x: (N, H, W, Cin) NHWC float32, t_emb: (N, T) float32."""
    w1, b1, wt, bt, w2, b2 = params
    N, H, W, Cin = x.shape
    Cout = w1.shape[-1]
    WC = W * Cout

    # Hoisted time-embedding projection (tiny M=N matmul stays in XLA).
    te = jax.nn.relu(t_emb @ wt + bt)                       # (N, Cout)
    te_t = jnp.tile(te, (1, W)).reshape(N, 1, WC)           # lane-dense, per batch

    xp = jnp.pad(x, ((0, 0), (1, 1), (1, 1), (0, 0)))       # pad=1
    xf = xp.reshape(N, H + 2, (W + 2) * Cin)                # flat lane layout

    w1b = _banded_conv_weights(w1, W)                       # (3, (W+2)*Cin,  WC)
    w2b = _banded_conv_weights(w2, W)                       # (3, (W+2)*Cout, WC)
    b1t = jnp.tile(b1, W).reshape(1, WC)
    b2t = jnp.tile(b2, W).reshape(1, WC)

    kernel = functools.partial(unet_block_kernel, H=H, W=W, cout=Cout)

    grid_spec = pltpu.PrefetchScalarGridSpec(
        num_scalar_prefetch=0,
        grid=(N,),
        in_specs=[
            pl.BlockSpec((1, H + 2, (W + 2) * Cin), lambda n: (n, 0, 0)),
            pl.BlockSpec((1, 1, WC), lambda n: (n, 0, 0)),
            pl.BlockSpec((3, (W + 2) * Cin, WC), lambda n: (0, 0, 0)),
            pl.BlockSpec((1, WC), lambda n: (0, 0)),
            pl.BlockSpec((3, (W + 2) * Cout, WC), lambda n: (0, 0, 0)),
            pl.BlockSpec((1, WC), lambda n: (0, 0)),
        ],
        out_specs=pl.BlockSpec((1, H, WC), lambda n: (n, 0, 0)),
        scratch_shapes=[pltpu.VMEM((H + 2, (W + 2) * Cout), jnp.float32)],
    )
    out_flat = pl.pallas_call(
        kernel,
        out_shape=jax.ShapeDtypeStruct((N, H, WC), jnp.float32),
        grid_spec=grid_spec,
        compiler_params=pltpu.CompilerParams(dimension_semantics=("parallel",)),
    )(xf, te_t, w1b, b1t, w2b, b2t)
    return out_flat.reshape(N, H, W, Cout)                  # back to NHWC (wrapper)


def reference(x, t_emb, params):
    """Pure-JAX reference matching the PyTorch forward (NHWC)."""
    w1, b1, wt, bt, w2, b2 = params
    dn = ('NHWC', 'HWIO', 'NHWC')
    h = jax.lax.conv_general_dilated(x, w1, (1, 1), 'SAME',
                                     dimension_numbers=dn) + b1
    h = jax.nn.relu(h)
    te = jax.nn.relu(t_emb @ wt + bt)                        # (N, Cout)
    h = h + te[:, None, None, :]
    h = jax.lax.conv_general_dilated(h, w2, (1, 1), 'SAME',
                                     dimension_numbers=dn) + b2
    return jax.nn.relu(h)


if __name__ == "__main__":
    N, Cin, Cout, H, W, T = 2, 4, 8, 16, 16, 32
    key = jax.random.PRNGKey(0)
    ks = jax.random.split(key, 8)

    def uinit(k, shape, fan_in):
        bound = 1.0 / np.sqrt(fan_in)
        return jax.random.uniform(k, shape, jnp.float32, -bound, bound)

    # Deterministic parameter init (PyTorch-style uniform(-1/sqrt(fan_in), ...))
    w1 = uinit(ks[0], (3, 3, Cin, Cout), 3 * 3 * Cin)     # conv1 weight (HWIO)
    b1 = uinit(ks[1], (Cout,), 3 * 3 * Cin)
    w2 = uinit(ks[2], (3, 3, Cout, Cout), 3 * 3 * Cout)   # conv2 weight (HWIO)
    b2 = uinit(ks[3], (Cout,), 3 * 3 * Cout)
    wt = uinit(ks[4], (T, Cout), T)                       # time_emb_proj weight
    bt = uinit(ks[5], (Cout,), T)

    x = jax.random.normal(ks[6], (N, H, W, Cin), jnp.float32)   # NHWC (= NCHW [2,4,16,16])
    t_emb = jax.random.normal(ks[7], (N, T), jnp.float32)

    params = (w1, b1, wt, bt, w2, b2)

    out = unet_block(x, t_emb, params)
    out = jax.block_until_ready(out)

    ref = reference(x, t_emb, params)
    assert out.shape == (N, H, W, Cout)
    np.testing.assert_allclose(np.asarray(out), np.asarray(ref),
                               rtol=5e-5, atol=5e-5)
    print("KERNEL_OK")
</pallas_src>

<mosaic_0001>
module attributes {stable_mosaic.version = 11 : i64} {
  func.func @unet_block_kernel(%arg0: i32, %arg1: memref<1x18x72xf32, #tpu.memory_space<vmem>>, %arg2: memref<1x1x128xf32, #tpu.memory_space<vmem>>, %arg3: memref<3x72x128xf32, #tpu.memory_space<vmem>>, %arg4: memref<1x128xf32, #tpu.memory_space<vmem>>, %arg5: memref<3x144x128xf32, #tpu.memory_space<vmem>>, %arg6: memref<1x128xf32, #tpu.memory_space<vmem>>, %arg7: memref<1x16x128xf32, #tpu.memory_space<vmem>>, %arg8: memref<18x144xf32, #tpu.memory_space<vmem>>) attributes {dimension_semantics = [#tpu.dimension_semantics<parallel>], iteration_bounds = array<i64: 2>, scalar_prefetch = 0 : i64, scratch_operands = 1 : i64, tpu.core_type = #tpu.core_type<tc>, window_params = [{transform_indices = @transform_0, window_bounds = array<i64: 1, 18, 72>}, {transform_indices = @transform_1, window_bounds = array<i64: 1, 1, 128>}, {pipeline_mode = #tpu.pipeline_mode<synchronous>, transform_indices = @transform_2, window_bounds = array<i64: 3, 72, 128>}, {pipeline_mode = #tpu.pipeline_mode<synchronous>, transform_indices = @transform_3, window_bounds = array<i64: 1, 128>}, {pipeline_mode = #tpu.pipeline_mode<synchronous>, transform_indices = @transform_4, window_bounds = array<i64: 3, 144, 128>}, {pipeline_mode = #tpu.pipeline_mode<synchronous>, transform_indices = @transform_5, window_bounds = array<i64: 1, 128>}, {transform_indices = @transform_6, window_bounds = array<i64: 1, 16, 128>}]} {
    %cst = arith.constant 0.000000e+00 : f32
    %0 = vector.broadcast %cst : f32 to vector<16x128xf32>
    %c0 = arith.constant 0 : index
    %c0_0 = arith.constant 0 : index
    %c0_1 = arith.constant 0 : index
    %1 = vector.load %arg1[%c0, %c0_0, %c0_1] : memref<1x18x72xf32, #tpu.memory_space<vmem>>, vector<1x16x72xf32>
    %2 = vector.shape_cast %1 : vector<1x16x72xf32> to vector<16x72xf32>
    %c0_2 = arith.constant 0 : index
    %c0_3 = arith.constant 0 : index
    %c0_4 = arith.constant 0 : index
    %3 = vector.load %arg3[%c0_2, %c0_3, %c0_4] : memref<3x72x128xf32, #tpu.memory_space<vmem>>, vector<1x72x128xf32>
    %4 = vector.shape_cast %3 : vector<1x72x128xf32> to vector<72x128xf32>
    %cst_5 = arith.constant dense<0.000000e+00> : vector<16x128xf32>
    %5 = tpu.matmul %2, %4, %cst_5 {dimension_numbers = #tpu.dot_dimension_numbers<[1], [0], [0], [1], [0, 0, 1, 1], [], []>} : vector<16x72xf32>, vector<72x128xf32>, vector<16x128xf32> -> vector<16x128xf32>
    %6 = arith.addf %0, %5 : vector<16x128xf32>
    %c0_6 = arith.constant 0 : index
    %c1 = arith.constant 1 : index
    %c0_7 = arith.constant 0 : index
    %7 = vector.load %arg1[%c0_6, %c1, %c0_7] : memref<1x18x72xf32, #tpu.memory_space<vmem>>, vector<1x16x72xf32>
    %8 = vector.shape_cast %7 : vector<1x16x72xf32> to vector<16x72xf32>
    %c1_8 = arith.constant 1 : index
    %c0_9 = arith.constant 0 : index
    %c0_10 = arith.constant 0 : index
    %9 = vector.load %arg3[%c1_8, %c0_9, %c0_10] : memref<3x72x128xf32, #tpu.memory_space<vmem>>, vector<1x72x128xf32>
    %10 = vector.shape_cast %9 : vector<1x72x128xf32> to vector<72x128xf32>
    %cst_11 = arith.constant dense<0.000000e+00> : vector<16x128xf32>
    %11 = tpu.matmul %8, %10, %cst_11 {dimension_numbers = #tpu.dot_dimension_numbers<[1], [0], [0], [1], [0, 0, 1, 1], [], []>} : vector<16x72xf32>, vector<72x128xf32>, vector<16x128xf32> -> vector<16x128xf32>
    %12 = arith.addf %6, %11 : vector<16x128xf32>
    %c0_12 = arith.constant 0 : index
    %c2 = arith.constant 2 : index
    %c0_13 = arith.constant 0 : index
    %13 = vector.load %arg1[%c0_12, %c2, %c0_13] : memref<1x18x72xf32, #tpu.memory_space<vmem>>, vector<1x16x72xf32>
    %14 = vector.shape_cast %13 : vector<1x16x72xf32> to vector<16x72xf32>
    %c2_14 = arith.constant 2 : index
    %c0_15 = arith.constant 0 : index
    %c0_16 = arith.constant 0 : index
    %15 = vector.load %arg3[%c2_14, %c0_15, %c0_16] : memref<3x72x128xf32, #tpu.memory_space<vmem>>, vector<1x72x128xf32>
    %16 = vector.shape_cast %15 : vector<1x72x128xf32> to vector<72x128xf32>
    %cst_17 = arith.constant dense<0.000000e+00> : vector<16x128xf32>
    %17 = tpu.matmul %14, %16, %cst_17 {dimension_numbers = #tpu.dot_dimension_numbers<[1], [0], [0], [1], [0, 0, 1, 1], [], []>} : vector<16x72xf32>, vector<72x128xf32>, vector<16x128xf32> -> vector<16x128xf32>
    %18 = arith.addf %12, %17 : vector<16x128xf32>
    %c0_18 = arith.constant 0 : index
    %c0_19 = arith.constant 0 : index
    %19 = vector.load %arg4[%c0_18, %c0_19] : memref<1x128xf32, #tpu.memory_space<vmem>>, vector<1x128xf32>
    %20 = vector.broadcast %19 : vector<1x128xf32> to vector<16x128xf32>
    %21 = arith.addf %18, %20 : vector<16x128xf32>
    %cst_20 = arith.constant 0.000000e+00 : f32
    %22 = vector.broadcast %cst_20 : f32 to vector<16x128xf32>
    %23 = arith.maximumf %21, %22 : vector<16x128xf32>
    %c0_21 = arith.constant 0 : index
    %c0_22 = arith.constant 0 : index
    %c0_23 = arith.constant 0 : index
    %24 = vector.load %arg2[%c0_21, %c0_22, %c0_23] : memref<1x1x128xf32, #tpu.memory_space<vmem>>, vector<1x1x128xf32>
    %25 = vector.shape_cast %24 : vector<1x1x128xf32> to vector<1x128xf32>
    %26 = vector.broadcast %25 : vector<1x128xf32> to vector<16x128xf32>
    %27 = arith.addf %23, %26 : vector<16x128xf32>
    %cst_24 = arith.constant 0.000000e+00 : f32
    %28 = vector.broadcast %cst_24 : f32 to vector<18x144xf32>
    %c0_25 = arith.constant 0 : index
    %c0_26 = arith.constant 0 : index
    %29 = vector.load %arg8[%c0_25, %c0_26] : memref<18x144xf32, #tpu.memory_space<vmem>>, vector<18x144xf32>
    tpu.vector_store %arg8[%c0_25, %c0_26], %28 {strides = array<i32>} : memref<18x144xf32, #tpu.memory_space<vmem>>, vector<18x144xf32>,
    %c1_27 = arith.constant 1 : index
    %c8 = arith.constant 8 : index
    %30 = vector.load %arg8[%c1_27, %c8] : memref<18x144xf32, #tpu.memory_space<vmem>>, vector<16x128xf32>
    tpu.vector_store %arg8[%c1_27, %c8], %27 {strides = array<i32>} : memref<18x144xf32, #tpu.memory_space<vmem>>, vector<16x128xf32>,
    %cst_28 = arith.constant 0.000000e+00 : f32
    %31 = vector.broadcast %cst_28 : f32 to vector<16x128xf32>
    %c0_29 = arith.constant 0 : index
    %c0_30 = arith.constant 0 : index
    %32 = vector.load %arg8[%c0_29, %c0_30] : memref<18x144xf32, #tpu.memory_space<vmem>>, vector<16x144xf32>
    %c0_31 = arith.constant 0 : index
    %c0_32 = arith.constant 0 : index
    %c0_33 = arith.constant 0 : index
    %33 = vector.load %arg5[%c0_31, %c0_32, %c0_33] : memref<3x144x128xf32, #tpu.memory_space<vmem>>, vector<1x144x128xf32>
    %34 = vector.shape_cast %33 : vector<1x144x128xf32> to vector<144x128xf32>
    %cst_34 = arith.constant dense<0.000000e+00> : vector<16x128xf32>
    %35 = tpu.matmul %32, %34, %cst_34 {dimension_numbers = #tpu.dot_dimension_numbers<[1], [0], [0], [1], [0, 0, 1, 1], [], []>} : vector<16x144xf32>, vector<144x128xf32>, vector<16x128xf32> -> vector<16x128xf32>
    %36 = arith.addf %31, %35 : vector<16x128xf32>
    %c1_35 = arith.constant 1 : index
    %c0_36 = arith.constant 0 : index
    %37 = vector.load %arg8[%c1_35, %c0_36] : memref<18x144xf32, #tpu.memory_space<vmem>>, vector<16x144xf32>
    %c1_37 = arith.constant 1 : index
    %c0_38 = arith.constant 0 : index
    %c0_39 = arith.constant 0 : index
    %38 = vector.load %arg5[%c1_37, %c0_38, %c0_39] : memref<3x144x128xf32, #tpu.memory_space<vmem>>, vector<1x144x128xf32>
    %39 = vector.shape_cast %38 : vector<1x144x128xf32> to vector<144x128xf32>
    %cst_40 = arith.constant dense<0.000000e+00> : vector<16x128xf32>
    %40 = tpu.matmul %37, %39, %cst_40 {dimension_numbers = #tpu.dot_dimension_numbers<[1], [0], [0], [1], [0, 0, 1, 1], [], []>} : vector<16x144xf32>, vector<144x128xf32>, vector<16x128xf32> -> vector<16x128xf32>
    %41 = arith.addf %36, %40 : vector<16x128xf32>
    %c2_41 = arith.constant 2 : index
    %c0_42 = arith.constant 0 : index
    %42 = vector.load %arg8[%c2_41, %c0_42] : memref<18x144xf32, #tpu.memory_space<vmem>>, vector<16x144xf32>
    %c2_43 = arith.constant 2 : index
    %c0_44 = arith.constant 0 : index
    %c0_45 = arith.constant 0 : index
    %43 = vector.load %arg5[%c2_43, %c0_44, %c0_45] : memref<3x144x128xf32, #tpu.memory_space<vmem>>, vector<1x144x128xf32>
    %44 = vector.shape_cast %43 : vector<1x144x128xf32> to vector<144x128xf32>
    %cst_46 = arith.constant dense<0.000000e+00> : vector<16x128xf32>
    %45 = tpu.matmul %42, %44, %cst_46 {dimension_numbers = #tpu.dot_dimension_numbers<[1], [0], [0], [1], [0, 0, 1, 1], [], []>} : vector<16x144xf32>, vector<144x128xf32>, vector<16x128xf32> -> vector<16x128xf32>
    %46 = arith.addf %41, %45 : vector<16x128xf32>
    %c0_47 = arith.constant 0 : index
    %c0_48 = arith.constant 0 : index
    %47 = vector.load %arg6[%c0_47, %c0_48] : memref<1x128xf32, #tpu.memory_space<vmem>>, vector<1x128xf32>
    %48 = vector.broadcast %47 : vector<1x128xf32> to vector<16x128xf32>
    %49 = arith.addf %46, %48 : vector<16x128xf32>
    %cst_49 = arith.constant 0.000000e+00 : f32
    %50 = vector.broadcast %cst_49 : f32 to vector<16x128xf32>
    %51 = arith.maximumf %49, %50 : vector<16x128xf32>
    %52 = vector.shape_cast %51 : vector<16x128xf32> to vector<1x16x128xf32>
    %c0_50 = arith.constant 0 : index
    %c0_51 = arith.constant 0 : index
    %c0_52 = arith.constant 0 : index
    %53 = vector.load %arg7[%c0_50, %c0_51, %c0_52] : memref<1x16x128xf32, #tpu.memory_space<vmem>>, vector<1x16x128xf32>
    tpu.vector_store %arg7[%c0_50, %c0_51, %c0_52], %52 {strides = array<i32>} : memref<1x16x128xf32, #tpu.memory_space<vmem>>, vector<1x16x128xf32>,
    return
  }
  func.func @transform_0(%arg0: i32) -> (i32, i32, i32) {
    %c0_i32 = arith.constant 0 : i32
    %c0_i32_0 = arith.constant 0 : i32
    %c0_i32_1 = arith.constant 0 : i32
    return %arg0, %c0_i32, %c0_i32_0 : i32, i32, i32
  }
  func.func @transform_1(%arg0: i32) -> (i32, i32, i32) {
    %c0_i32 = arith.constant 0 : i32
    %c0_i32_0 = arith.constant 0 : i32
    %c0_i32_1 = arith.constant 0 : i32
    return %arg0, %c0_i32, %c0_i32_0 : i32, i32, i32
  }
  func.func @transform_2(%arg0: i32) -> (i32, i32, i32) {
    %c0_i32 = arith.constant 0 : i32
    %c0_i32_0 = arith.constant 0 : i32
    %c0_i32_1 = arith.constant 0 : i32
    %c0_i32_2 = arith.constant 0 : i32
    return %c0_i32, %c0_i32_0, %c0_i32_1 : i32, i32, i32
  }
  func.func @transform_3(%arg0: i32) -> (i32, i32) {
    %c0_i32 = arith.constant 0 : i32
    %c0_i32_0 = arith.constant 0 : i32
    %c0_i32_1 = arith.constant 0 : i32
    return %c0_i32, %c0_i32_0 : i32, i32
  }
  func.func @transform_4(%arg0: i32) -> (i32, i32, i32) {
    %c0_i32 = arith.constant 0 : i32
    %c0_i32_0 = arith.constant 0 : i32
    %c0_i32_1 = arith.constant 0 : i32
    %c0_i32_2 = arith.constant 0 : i32
    return %c0_i32, %c0_i32_0, %c0_i32_1 : i32, i32, i32
  }
  func.func @transform_5(%arg0: i32) -> (i32, i32) {
    %c0_i32 = arith.constant 0 : i32
    %c0_i32_0 = arith.constant 0 : i32
    %c0_i32_1 = arith.constant 0 : i32
    return %c0_i32, %c0_i32_0 : i32, i32
  }
  func.func @transform_6(%arg0: i32) -> (i32, i32, i32) {
    %c0_i32 = arith.constant 0 : i32
    %c0_i32_0 = arith.constant 0 : i32
    %c0_i32_1 = arith.constant 0 : i32
    return %arg0, %c0_i32, %c0_i32_0 : i32, i32, i32
  }
}

</mosaic_0001>

<bundles_post_ra>
// kernel: tpu_custom_call.1
= control target key start
LH: loop header
LB: loop body
LE: loop exit
PB: predicated region body
PF: predicated region fallthrough
CT: control target
= control target key end

     0   :  { %11 = vsyncpa [#allocation4], 0  ;;  %s1718_s0 = inlined_call_operand.vmem [shape: f32[2,18,72], index: 0, kind: input, shape index: {}]   ;;  %s1719_s1 = inlined_call_operand.vmem [shape: f32[2,1,128], index: 1, kind: input, shape index: {}]   ;;  %s1720_s2 = inlined_call_operand.hbm [shape: f32[3,72,128], index: 2, kind: input, shape index: {}]   ;;  %s1721_s3 = inlined_call_operand.vmem [shape: f32[1,128], index: 3, kind: input, shape index: {}]   ;;  %s1722_s4 = inlined_call_operand.hbm [shape: f32[3,144,128], index: 4, kind: input, shape index: {}]   ;;  %s1723_s5 = inlined_call_operand.vmem [shape: f32[1,128], index: 5, kind: input, shape index: {}]   ;;  %s1724_s6 = inlined_call_operand.hbm [shape: f32[2,16,128], index: 6, kind: output, shape index: {}]  }
   0x1   :  { %12 = vsyncpa [#allocation7], 0 }
   0x2   :  { %13 = vsyncpa [#allocation5], 0 }
   0x3   :  { %15 = vsyncpa [#allocation5 + $0x1], 0  ;;  %s1452_s21 = smov 0   ;;  %s1454_s22 = smov 0  }
   0x4   :  { %s1456_s23 = smov 0   ;;  %s1458_s24 = smov 0  }
   0x5 LB: > { %s1473_s25 = sadd.s32 4294967295, %s1407_s24   ;;  %s1094_s26 = sadd.s32 4294967294, %s1407_s24   ;;  %s1407_s24 = sphi %s1458_s24, %s1738_s24   ;;  %s1403_s23 = sphi %s1456_s23, %s1737_s23   ;;  %s1399_s22 = sphi %s1454_s22, %s1736_s22   ;;  %s1395_s21 = sphi %s1452_s21, %s1735_s21  }
   0x6   : > { %s1477_s27 = sadd.s32 1, %s1407_s24   ;;  %s164_s28 = sadd.s32 1, %s1403_s23 }
   0x7   : > { %s161_s29 = ssub.s32 %s1407_s24, %s1477_s27  ;;  %p174_p0 = scmp.ne.s32.totalorder %s1403_s23, %s1399_s22 }
   0x8   : > { %p162_p1 = scmp.eq.s32.totalorder %s161_s29, 0  ;;  %p175_p2 = scmp.eq.s32.totalorder %s1473_s25, 1 }
   0x9   : > { %p180_p3 = scmp.ne.s32.totalorder %s1399_s22, %s1395_s21  ;;  %p181_p4 = scmp.eq.s32.totalorder %s1094_s26, 1 }
   0xa   : > { %s1488_s30 = scalar_select %p162_p1, %s1403_s23, %s164_s28  }
   0xb   : > { %p1490_p5 = por %p175_p2, %p174_p0  ;;  %p1494_p6 = por %p181_p4, %p180_p3 }
   0xc   : > { %p1095_p7 = scmp.ge.s32.totalorder %s1407_s24, 1  ;;  %p188_p8 = scmp.lt.s32.totalorder %s1407_s24, 3 }
   0xd   : > { %s1727_s8 = scalar_select %p1494_p6, 1, 0 }
   0xe   : > { %p1725_p9 = scmp.eq.s32.totalorder %s1473_s25, 0  ;;  %p1501_p10 = pnand %p1095_p7, %p188_p8 }
   0xf   : > { %s1409_s10 = smov [#allocation3]   ;;  %s1410_s13 = smov [#allocation6]  }
  0x10   : > { %s200_s11 = sshll.u32 %s1409_s10, 4  ;;  %p1232_p11 = pneg %p1501_p10  ;;  %s201_s11 = int_to_ptr.vmem [resolvable:$true] %s200_s11 }
  0x11   : > { %s216_s14 = sshll.u32 %s1410_s13, 4  ;;  %s1298_s15 = scalar_lea.vmem %s201_s11, 3456  ;;  %s217_s14 = int_to_ptr.vmem [resolvable:$true] %s216_s14 }
  0x12   : > { %p1509_p12 = pnand %p1725_p9, %p1232_p11  ;;  %p1299_p0 = scmp.ne.s32.totalorder %s201_s11, %s1298_s15 }
  0x13   : > { %p1306_p3 = scmp.lt.s32.totalorder %s201_s11, %s201_s11  ;;  %p1307_p4 = scmp.lt.s32.totalorder %s1298_s15, %s1298_s15 }
  0x14   : > { %p1289_p13 = pneg %p1509_p12 }
  0x15   : > { %p1308_p7 = por %p1307_p4, %p1306_p3 }
  0x16   : > { %p1301_p1 = pnand %p1299_p0, %p1289_p13 }
  0x18   : > { %p1302_p2 = pneg %p1301_p1 }
  0x1a   : > { %p1309_p8 = pnand %p1308_p7, %p1302_p2 }
  0x1c   : > { %1312 = shalt.err (!%p1309_p8)
}
  0x1d   : > { %s1411_s16 = smov 128   ;;  %s1412_s17 = smov 8  }
  0x1e   : > { %1235 = dma.hbm_to_vmem [thread:$0]  (!%p1509_p12), %s1720_s2, 3456, %s201_s11, [#allocation4], %s1411_s16, %s1411_s16, %s1412_s17  }
  0x1f   : > { %s1324_s20 = scalar_lea.vmem %s217_s14, 6912  ;;  %p1332_p9 = scmp.lt.s32.totalorder %s217_s14, %s217_s14 }
  0x20   : > { %p1325_p11 = scmp.ne.s32.totalorder %s217_s14, %s1324_s20  ;;  %p1333_p6 = scmp.lt.s32.totalorder %s1324_s20, %s1324_s20 }
  0x22   : > { %p1327_p0 = pnand %p1325_p11, %p1289_p13  ;;  %p1334_p3 = por %p1333_p6, %p1332_p9 }
  0x24   : > { %p1328_p1 = pneg %p1327_p0 }
  0x26   : > { %p1335_p2 = pnand %p1334_p3, %p1328_p1 }
  0x28   : > { %1338 = shalt.err (!%p1335_p2)
}
  0x29   : > { %1238 = dma.hbm_to_vmem [thread:$0]  (!%p1509_p12), %s1722_s4, 6912, %s217_s14, [#allocation7], %s1411_s16, %s1411_s16, %s1412_s17  }
  0x2a   : > { %249 = sbr.rel (%p1501_p10) target bundleno = 680 (0x2a8), region = 44  ;;  %p1730_p4 = scmp.eq.s32.totalorder (!%p1501_p10), %s1473_s25, 0 }
  0x2f   : > { %1382 = dma.done.wait (%p1730_p4), [#allocation4], 3456   ;;  %p1731_p13 = pmov %p1730_p4 }
  0x30   : > { %p1732_p7 = pmov %p1730_p4 }
  0x31   : > { %1384 = vsyncadd (%p1731_p13), [#allocation4], 4294963840 }
  0x32   : > { %1386 = dma.done.wait (%p1732_p7), [#allocation7], 6912   ;;  %p1733_p6 = pmov %p1730_p4 }
  0x33   : > { %v316_v0 = vld [vmem:[#allocation3 + $0x88] sm:$0xff]  ;;  %v304_v1 = vld [vmem:[#allocation3 + $0x40] sm:$0xff]  ;;  %p286_p9 = scmp.lt.s32.totalorder %s1473_s25, 1  ;;  %v303_v3 = vld [vmem:[#allocation3 + $0x38] sm:$0xff]  ;;  %vm317_vm0 = vcmask 588800   ;;  %vm601_vm1 = vcmask 123904  }
  0x34   : > { %1388 = vsyncadd (%p1733_p6), [#allocation7], 4294960384  ;;  %v315_v2 = vld [vmem:[#allocation3 + $0x80] sm:$0xff]  ;;  %1158 = vmatprep.subr.mxu0 %v316_v0  ;;  %1179 = vmatprep.subr.mxu1 %v304_v1  ;;  %v314_v4 = vld [vmem:[#allocation3 + $0x78] sm:$0xff]  ;;  %v1413_v34 = vmov 0.0   ;;  %vm596_vm2 = vcmask 130048  }
  0x35   : > { %1159 = vmatpush3.msra.mxu0 %v316_v0  ;;  %1180 = vmatpush3.msra.mxu1 %v304_v1  ;;  %v302_v5 = vld [vmem:[#allocation3 + $0x30] sm:$0xff]  ;;  %v301_v7 = vld [vmem:[#allocation3 + $0x28] sm:$0xff]  ;;  %s1545_s29 = scalar_select %p286_p9, %s1473_s25, 1  ;;  %v300_v9 = vld [vmem:[#allocation3 + $0x20] sm:$0xff]  ;;  %595 = vst [vmem:[#allocation2] sm:$0xff] %v1413_v34  ;;  %vm605_vm3 = vcmask 1040384  }
  0x36   : > { %1160 = vmatprep.subr.mxu0 %v315_v2  ;;  %1181 = vmatprep.subr.mxu1 %v303_v3  ;;  %v313_v6 = vld [vmem:[#allocation3 + $0x70] sm:$0xff]  ;;  %v312_v8 = vld [vmem:[#allocation3 + $0x68] sm:$0xff]  ;;  %v311_v10 = vld [vmem:[#allocation3 + $0x60] sm:$0xff]  ;;  %598 = vst [vmem:[#allocation2 + $0x10] sm:$0xff] %v1413_v34  ;;  %s1414_s18 = smov 8   ;;  %vm626_vm4 = vcmask 1040448  }
  0x37   : > { %1161 = vmatpush3.msra.mxu0 %v315_v2  ;;  %1182 = vmatpush3.msra.mxu1 %v303_v3  ;;  %v299_v11 = vld [vmem:[#allocation3 + $0x18] sm:$0xff]  ;;  %s1221_s9 = smul.u32 24, %s1545_s29  ;;  %v298_v13 = vld [vmem:[#allocation3 + $0x10] sm:$0xff]  ;;  %v297_v15 = vld [vmem:[#allocation3 + $0x8] sm:$0xff]  ;;  %600 = vst [vmem:[#allocation2 + $0x20] sm:$0x3] %v1413_v34  ;;  %s293_s17 = scalar_lea.vmem %s1719_s1, %s1545_s29 }
  0x38   : > { %1162 = vmatprep.subr.mxu0 %v314_v4  ;;  %1183 = vmatprep.subr.mxu1 %v302_v5  ;;  %v310_v12 = vld [vmem:[#allocation3 + $0x58] sm:$0xff]  ;;  %v309_v14 = vld [vmem:[#allocation3 + $0x50] sm:$0xff]  ;;  %v308_v16 = vld [vmem:[#allocation3 + $0x48] sm:$0xff]  ;;  %602 = vst.msk [vmem:[#allocation2 + $0x28] sm:$0x3] %vm601_vm1, %v1413_v34  ;;  %vm628_vm5 = vcmask 57344  }
  0x39   : > { %1163 = vmatpush3.msra.mxu0 %v314_v4  ;;  %1184 = vmatpush3.msra.mxu1 %v302_v5  ;;  %s1551_s12 = scalar_lea.vmem %s1718_s0, %s1221_s9  ;;  %v296_v17 = vld [vmem:[#allocation3] sm:$0xff]  ;;  %v491_v22 = vld [vmem:[#allocation3 + $0xd0] sm:$0xff]  ;;  %v490_v24 = vld [vmem:[#allocation3 + $0xc8] sm:$0xff]  ;;  %597 = vst.msk [vmem:[#allocation2 + $0x8] sm:$0xff] %vm596_vm2, %v1413_v34  ;;  %vm618_vm6 = vcmask 1047617   ;;  %vm620_vm7 = vcmask 64513  }
  0x3a   : > { %1164 = vmatprep.subr.mxu0 %v313_v6  ;;  %1185 = vmatprep.subr.mxu1 %v301_v7  ;;  %v305_v18 = vld [vmem:[%s1551_s12 + $0x1] sm:$0xff]  ;;  %v306_v20 = vld [vmem:[%s1551_s12 + $0x9] sm:$0xff]  ;;  %v486_v28 = vld [vmem:[#allocation3 + $0xa8] sm:$0xff]  ;;  %599 = vst.msk [vmem:[#allocation2 + $0x18] sm:$0xff] %vm596_vm2, %v1413_v34  ;;  %vm622_vm8 = vcmask 1047616   ;;  %vm624_vm9 = vcmask 64512  }
  0x3b   : > { %1165 = vmatpush3.msra.mxu0 %v313_v6  ;;  %1186 = vmatpush3.msra.mxu1 %v301_v7  ;;  %v294_v19 = vld [vmem:[%s1551_s12] sm:$0xff]  ;;  %v295_v21 = vld [vmem:[%s1551_s12 + $0x8] sm:$0xff]  ;;  %v489_v25 = vld [vmem:[#allocation3 + $0xc0] sm:$0xff]  ;;  %vm681_vm10 = vcmask 1046528   ;;  %vm880_vm11 = vcmask 1045504   ;;  %s283_s19 = sand.u32 1, %s1399_s22  }
  0x3c   : > { %1166 = vmatprep.subr.mxu0 %v312_v8  ;;  %1187 = vmatprep.subr.mxu1 %v300_v9  ;;  %v480_v23 = vld [vmem:[%s1551_s12 + $0x2] sm:$0xff]  ;;  %v485_v29 = vld [vmem:[#allocation3 + $0xa0] sm:$0xff]  ;;  %v648_v35 = vld [vmem:[#allocation6 + $0x70] sm:$0xff]  ;;  %s1102_s28 = sshll.u32 %s283_s19, 4  ;;  %s1124_s10 = sshll.u32 %s1473_s25, 8 }
  0x3d   : > { %1167 = vmatpush3.msra.mxu0 %v312_v8  ;;  %1188 = vmatpush3.msra.mxu1 %v300_v9  ;;  %v488_v26 = vld [vmem:[#allocation3 + $0xb8] sm:$0xff]  ;;  %v487_v27 = vld [vmem:[#allocation3 + $0xb0] sm:$0xff]  ;;  %v672_v36 = vld [vmem:[#allocation6 + $0x108] sm:$0xff]  ;;  %s285_s29 = scalar_lea.vmem [#allocation8], %s1102_s28  ;;  %s1675_s13 = scalar_lea.hbm %s1724_s6, %s1124_s10 }
  0x3e   : > { %1168 = vmatprep.subr.mxu0 %v311_v10  ;;  %1189 = vmatprep.subr.mxu1 %v299_v11  ;;  %v484_v30 = vld [vmem:[#allocation3 + $0x98] sm:$0xff]  ;;  %v483_v31 = vld [vmem:[#allocation3 + $0x90] sm:$0xff]  ;;  %v647_v38 = vld [vmem:[#allocation6 + $0x68] sm:$0xff]  ;;  %s1001_s9 = sshll.u32 %s285_s29, 4  ;;  %s1677_s14 = scalar_lea.sflag [#allocation5], %s283_s19  ;;  %s1670_s9 = int_to_ptr.vmem [resolvable:$true] %s1001_s9 }
  0x3f   : > { %1169 = vmatpush3.msra.mxu0 %v311_v10  ;;  %1190 = vmatpush3.msra.mxu1 %v299_v11  ;;  %v481_v32 = vld [vmem:[%s1551_s12 + $0xa] sm:$0xff]  ;;  %v649_v33 = vld [vmem:[#allocation6 + $0x78] sm:$0xff]  ;;  %v669_v41 = vld [vmem:[#allocation6 + $0xf0] sm:$0xff]  ;;  %s1339_s15 = scalar_lea.vmem %s1670_s9, 256  ;;  %s1415_s25 = smov [#allocation8]  }
  0x40   : > { %1170 = vmatprep.subr.mxu0 %v310_v12  ;;  %1191 = vmatprep.subr.mxu1 %v298_v13  ;;  %v671_v37 = vld [vmem:[#allocation6 + $0x100] sm:$0xff]  ;;  %v670_v39 = vld [vmem:[#allocation6 + $0xf8] sm:$0xff]  ;;  %v668_v43 = vld [vmem:[#allocation6 + $0xe8] sm:$0xff]  ;;  %p1340_p10 = scmp.ne.s32.totalorder %s1670_s9, %s1339_s15  ;;  %s1343_s16 = sshll.u32 %s1415_s25, 4  ;;  %s1344_s16 = int_to_ptr.vmem [resolvable:$false] %s1343_s16 }
  0x41   : > { %1171 = vmatpush3.msra.mxu0 %v310_v12  ;;  %1192 = vmatpush3.msra.mxu1 %v298_v13  ;;  %v646_v40 = vld [vmem:[#allocation6 + $0x60] sm:$0xff]  ;;  %v645_v42 = vld [vmem:[#allocation6 + $0x58] sm:$0xff]  ;;  %v644_v44 = vld [vmem:[#allocation6 + $0x50] sm:$0xff]  ;;  %p1346_p11 = scmp.lt.s32.totalorder %s1670_s9, %s1344_s16 }
  0x42   : > { %1172 = vmatprep.subr.mxu0 %v309_v14  ;;  %1193 = vmatprep.subr.mxu1 %v297_v15  ;;  %v667_v45 = vld [vmem:[#allocation6 + $0xe0] sm:$0xff]  ;;  %v643_v46 = vld [vmem:[#allocation6 + $0x48] sm:$0xff]  ;;  %v666_v47 = vld [vmem:[#allocation6 + $0xd8] sm:$0xff]  ;;  %p1341_p12 = pnand %p1340_p10, %p1490_p5 }
  0x43   : > { %1173 = vmatpush3.msra.mxu0 %v309_v14  ;;  %1194 = vmatpush3.msra.mxu1 %v297_v15  ;;  %v642_v48 = vld [vmem:[#allocation6 + $0x40] sm:$0xff]  ;;  %v665_v49 = vld [vmem:[#allocation6 + $0xd0] sm:$0xff]  ;;  %v641_v50 = vld [vmem:[#allocation6 + $0x38] sm:$0xff] }
  0x44   : > { %1174 = vmatprep.subr.mxu0 %v308_v16  ;;  %1195 = vmatprep.subr.mxu1 %v296_v17  ;;  %v664_v51 = vld [vmem:[#allocation6 + $0xc8] sm:$0xff]  ;;  %v640_v52 = vld [vmem:[#allocation6 + $0x30] sm:$0xff]  ;;  %v638_v54 = vld [vmem:[#allocation6 + $0x20] sm:$0xff]  ;;  %p1342_p8 = pneg %p1341_p12 }
  0x45   : > { %1175 = vmatpush3.msra.mxu0 %v308_v16  ;;  %1176 = vmatprep.mubr.msk.f32.mxu0 %vm317_vm0, %v305_v18  ;;  %v639_v53 = vld [vmem:[#allocation6 + $0x28] sm:$0xff]  ;;  %v663_v57 = vld [vmem:[#allocation6 + $0xc0] sm:$0xff]  ;;  %v637_v58 = vld [vmem:[#allocation6 + $0x18] sm:$0xff] }
  0x46   : > { %1196 = vmatpush3.msra.mxu1 %v296_v17  ;;  %1197 = vmatprep.mubr.msk.f32.mxu1 %vm317_vm0, %v294_v19  ;;  %v662_v62 = vld [vmem:[#allocation6 + $0xb8] sm:$0xff]  ;;  %v636_v63 = vld [vmem:[#allocation6 + $0x10] sm:$0xff]  ;;  %v635_v3 = vld [vmem:[#allocation6 + $0x8] sm:$0xff] }
  0x47   : > { %1177 = vmatmul.mubr.msk.f32.vlgmr.msra.gmra.mxu0 %vm317_vm0, %v306_v20  ;;  %1198 = vmatmul.mubr.msk.f32.vlgmr.msra.gmra.mxu1 %vm317_vm0, %v295_v21  ;;  %v1110_v1 = vld [vmem:[%s1721_s3] ss:$0 sm:$0xff]  ;;  %v661_v2 = vld [vmem:[#allocation6 + $0xb0] sm:$0xff]  ;;  %v660_v9 = vld [vmem:[#allocation6 + $0xa8] sm:$0xff] }
  0x48   : > { %1200 = vmatprep.subr.mxu0 %v491_v22  ;;  %1218 = vmatprep.mubr.msk.f32.mxu0 %vm317_vm0, %v480_v23  ;;  %v634_v10 = vld [vmem:[#allocation6] sm:$0xff]  ;;  %v1111_v11 = vld [vmem:[%s293_s17] ss:$0 sm:$0xff]  ;;  %v651_v13 = vld [vmem:[#allocation6 + $0x88] sm:$0xff]  ;;  %s1345_s17 = scalar_lea.vmem %s1344_s16, 512 }
  0x49   : > { %1201 = vmatpush3.msra.mxu0 %v491_v22  ;;  %698 = vmatprep.subr.mxu1 %v1413_v34  ;;  %v659_v12 = vld [vmem:[#allocation6 + $0xa0] sm:$0xff]  ;;  %v658_v16 = vld [vmem:[#allocation6 + $0x98] sm:$0xff]  ;;  %v657_v22 = vld [vmem:[#allocation6 + $0x90] sm:$0xff]  ;;  %p1347_p0 = scmp.lt.s32.totalorder %s1345_s17, %s1339_s15 }
  0x4a   : > { %1202 = vmatprep.subr.mxu0 %v490_v24  ;;  %699 = vmatpush1.msra.mxu1 %v672_v36  ;;  %v650_v17 = vld [vmem:[#allocation6 + $0x80] sm:$0xff]  ;;  %v674_v23 = vld [vmem:[#allocation6 + $0x118] sm:$0xff] }
  0x4b   : > { %1203 = vmatpush3.msra.mxu0 %v490_v24  ;;  %700 = vmatprep.subr.mxu1 %v1413_v34  ;;  %p1348_p1 = por %p1347_p0, %p1346_p11 }
  0x4c   : > { %1204 = vmatprep.subr.mxu0 %v489_v25  ;;  %701 = vmatpush1.msra.mxu1 %v671_v37 }
  0x4d   : > { %1205 = vmatpush3.msra.mxu0 %v489_v25  ;;  %702 = vmatprep.subr.mxu1 %v1413_v34  ;;  %v673_v25 = vld [vmem:[#allocation6 + $0x110] sm:$0xff]  ;;  %p1349_p3 = pnand %p1348_p1, %p1342_p8 }
  0x4e   : > { %1206 = vmatprep.subr.mxu0 %v488_v26  ;;  %703 = vmatpush1.msra.mxu1 %v670_v39 }
  0x4f   : > { %1207 = vmatpush3.msra.mxu0 %v488_v26  ;;  %704 = vmatprep.subr.mxu1 %v1413_v34 }
  0x50   : > { %1208 = vmatprep.subr.mxu0 %v487_v27  ;;  %705 = vmatpush1.msra.mxu1 %v669_v41 }
  0x51   : > { %1209 = vmatpush3.msra.mxu0 %v487_v27  ;;  %706 = vmatprep.subr.mxu1 %v1413_v34 }
  0x52   : > { %1210 = vmatprep.subr.mxu0 %v486_v28  ;;  %707 = vmatpush1.msra.mxu1 %v668_v43 }
  0x53   : > { %1211 = vmatpush3.msra.mxu0 %v486_v28  ;;  %708 = vmatprep.subr.mxu1 %v1413_v34 }
  0x54   : > { %1212 = vmatprep.subr.mxu0 %v485_v29  ;;  %709 = vmatpush1.msra.mxu1 %v667_v45 }
  0x55   : > { %1213 = vmatpush3.msra.mxu0 %v485_v29  ;;  %710 = vmatprep.subr.mxu1 %v1413_v34 }
  0x56   : > { %1214 = vmatprep.subr.mxu0 %v484_v30  ;;  %711 = vmatpush1.msra.mxu1 %v666_v47 }
  0x57   : > { %1215 = vmatpush3.msra.mxu0 %v484_v30  ;;  %712 = vmatprep.subr.mxu1 %v1413_v34 }
  0x58   : > { %1216 = vmatprep.subr.mxu0 %v483_v31  ;;  %713 = vmatpush1.msra.mxu1 %v665_v49 }
  0x59   : > { %1217 = vmatpush3.msra.mxu0 %v483_v31  ;;  %714 = vmatprep.subr.mxu1 %v1413_v34 }
  0x5a   : > { %1219 = vmatmul.mubr.msk.f32.vlgmr.msra.gmra.mxu0 %vm317_vm0, %v481_v32  ;;  %778 = vmatprep.subr.mxu0 %v1413_v34 }
  0x5b   : > { %779 = vmatpush1.msra.mxu0 %v649_v33  ;;  %715 = vmatpush1.msra.mxu1 %v664_v51 }
  0x5c   : > { %780 = vmatprep.subr.mxu0 %v1413_v34  ;;  %716 = vmatprep.subr.mxu1 %v1413_v34 }
  0x5d   : > { %781 = vmatpush1.msra.mxu0 %v648_v35  ;;  %717 = vmatpush1.msra.mxu1 %v663_v57  ;;  %v869_v57 = vld [vmem:[#allocation6 + $0x178] sm:$0xff] }
  0x5e   : > { %782 = vmatprep.subr.mxu0 %v1413_v34  ;;  %718 = vmatprep.subr.mxu1 %v1413_v34 }
  0x5f   : > { %783 = vmatpush1.msra.mxu0 %v647_v38  ;;  %719 = vmatpush1.msra.mxu1 %v662_v62  ;;  %v864_v62 = vld [vmem:[#allocation6 + $0x150] sm:$0xff] }
  0x60   : > { %784 = vmatprep.subr.mxu0 %v1413_v34  ;;  %720 = vmatprep.subr.mxu1 %v1413_v34 }
  0x61   : > { %785 = vmatpush1.msra.mxu0 %v646_v40  ;;  %721 = vmatpush1.msra.mxu1 %v661_v2  ;;  %v860_v2 = vld [vmem:[#allocation6 + $0x130] sm:$0xff] }
  0x62   : > { %786 = vmatprep.subr.mxu0 %v1413_v34  ;;  %722 = vmatprep.subr.mxu1 %v1413_v34 }
  0x63   : > { %787 = vmatpush1.msra.mxu0 %v645_v42  ;;  %723 = vmatpush1.msra.mxu1 %v660_v9  ;;  %v874_v9 = vld [vmem:[#allocation6 + $0x1a0] sm:$0xff] }
  0x64   : > { %788 = vmatprep.subr.mxu0 %v1413_v34  ;;  %724 = vmatprep.subr.mxu1 %v1413_v34 }
  0x65   : > { %789 = vmatpush1.msra.mxu0 %v644_v44  ;;  %725 = vmatpush1.msra.mxu1 %v659_v12  ;;  %v873_v44 = vld [vmem:[#allocation6 + $0x198] sm:$0xff] }
  0x66   : > { %790 = vmatprep.subr.mxu0 %v1413_v34  ;;  %726 = vmatprep.subr.mxu1 %v1413_v34 }
  0x67   : > { %791 = vmatpush1.msra.mxu0 %v643_v46  ;;  %727 = vmatpush1.msra.mxu1 %v658_v16 }
  0x68   : > { %792 = vmatprep.subr.mxu0 %v1413_v34  ;;  %728 = vmatprep.subr.mxu1 %v1413_v34 }
  0x69   : > { %793 = vmatpush1.msra.mxu0 %v642_v48  ;;  %729 = vmatpush1.msra.mxu1 %v657_v22 }
  0x6a   : > { %794 = vmatprep.subr.mxu0 %v1413_v34  ;;  %758 = vmatprep.subr.mxu1 %v1413_v34 }
  0x6b   : > { %795 = vmatpush1.msra.mxu0 %v641_v50  ;;  %759 = vmatpush2.msra.mxu1 %v674_v23  ;;  %v872_v50 = vld [vmem:[#allocation6 + $0x190] sm:$0xff] }
  0x6c   : > { %796 = vmatprep.subr.mxu0 %v1413_v34  ;;  %760 = vmatprep.subr.mxu1 %v1413_v34 }
  0x6d   : > { %797 = vmatpush1.msra.mxu0 %v640_v52  ;;  %761 = vmatpush2.msra.mxu1 %v673_v25  ;;  %v871_v52 = vld [vmem:[#allocation6 + $0x188] sm:$0xff] }
  0x6e   : > { %798 = vmatprep.subr.mxu0 %v1413_v34  ;;  %897 = vmatprep.subr.mxu1 %v1413_v34 }
  0x6f   : > { %799 = vmatpush1.msra.mxu0 %v639_v53 }
  0x70   : > { %800 = vmatprep.subr.mxu0 %v1413_v34 }
  0x71   : > { %801 = vmatpush1.msra.mxu0 %v638_v54 }
  0x72   : > { %802 = vmatprep.subr.mxu0 %v1413_v34 }
  0x73   : > { %803 = vmatpush1.msra.mxu0 %v637_v58  ;;  %v868_v58 = vld [vmem:[#allocation6 + $0x170] sm:$0xff] }
  0x74   : > { %804 = vmatprep.subr.mxu0 %v1413_v34 }
  0x75   : > { %805 = vmatpush1.msra.mxu0 %v636_v63  ;;  %v863_v63 = vld [vmem:[#allocation6 + $0x148] sm:$0xff] }
  0x76   : > { %806 = vmatprep.subr.mxu0 %v1413_v34 }
  0x77   : > { %807 = vmatpush1.msra.mxu0 %v635_v3  ;;  %v859_v3 = vld [vmem:[#allocation6 + $0x128] sm:$0xff] }
  0x78   : > { %808 = vmatprep.subr.mxu0 %v1413_v34 }
  0x79   : > { %809 = vmatpush1.msra.mxu0 %v634_v10 }
  0x7a   : > { %838 = vmatprep.subr.mxu0 %v1413_v34 }
  0x7b   : > { %839 = vmatpush2.msra.mxu0 %v651_v13 }
  0x7c   : > { %840 = vmatprep.subr.mxu0 %v1413_v34 }
  0x7d   : > { %841 = vmatpush2.msra.mxu0 %v650_v17 }
 0x107   : > { %v1178_v55 = vpop.f32.mrf.mxu0  ;;  %v1199_v56 = vpop.f32.mrf.mxu1 }
 0x108   : > { %v477_v61 = vadd.f32 %v1199_v56, %v1178_v55  ;;  %v870_v56 = vld [vmem:[#allocation6 + $0x180] sm:$0xff] }
 0x109   : > { %v390_v59 = vpop.f32.mrf.mxu0  ;;  %v471_v60 = vpop.f32.mrf.mxu1 }
 0x10a   : > { %v472_v4 = vadd.f32 %v471_v60, %v390_v59  ;;  %v867_v59 = vld [vmem:[#allocation6 + $0x168] sm:$0xff]  ;;  %v866_v60 = vld [vmem:[#allocation6 + $0x160] sm:$0xff] }
 0x11a   : > { %v1220_v0 = vpop.f32.mrf.mxu0 }
 0x11b   : > { %v574_v5 = vadd.f32 %v1220_v0, %v477_v61  ;;  %v865_v61 = vld [vmem:[#allocation6 + $0x158] sm:$0xff]  ;;  %v862_v0 = vld [vmem:[#allocation6 + $0x140] sm:$0xff] }
 0x11c   : > { %v564_v6 = vpop.f32.mrf.mxu0 }
 0x11d   : > { %v583_v7 = vadd.f32 %v1110_v1, %v574_v5  ;;  %v573_v8 = vadd.f32 %v564_v6, %v472_v4  ;;  %v858_v4 = vld [vmem:[#allocation6 + $0x120] sm:$0xff]  ;;  %v875_v5 = vld [vmem:[#allocation6 + $0x1a8] sm:$0xff] }
 0x11f   : > { %v585_v14 = vmax.f32 %v583_v7, 0.0  ;;  %v582_v15 = vadd.f32 %v1110_v1, %v573_v8  ;;  %v861_v1 = vld [vmem:[#allocation6 + $0x138] sm:$0xff] }
 0x121   : > { %v584_v18 = vmax.f32 %v582_v15, 0.0  ;;  %v594_v19 = vadd.f32 %v1111_v11, %v585_v14 }
 0x123   : > { %v607_v20 = vrot.slane %v594_v19, 7  ;;  %v593_v21 = vadd.f32 %v1111_v11, %v584_v18 }
 0x125   : > { %613 = vrot.lane.b32.xlu1 %v607_v20, %s1414_s18  ;;  %v606_v24 = vrot.slane %v593_v21, 7 }
 0x127   : > { %609 = vrot.lane.b32.xlu0 %v606_v24, %s1414_s18  ;;  %v608_v26 = vsel %vm605_vm3, %v606_v24, %v607_v20 }
 0x12b   : > { %611 = vrot.lane.b32.xlu0 %v608_v26, %s1414_s18  ;;  %v1118_v26 = vld [vmem:[%s1723_s5] ss:$0 sm:$0xff] }
 0x197   : > { %v614_v27 = vpop.permute.xlu1 %613 }
 0x198   : > { %627 = vst.msk [vmem:[#allocation2 + $0x20] sm:$0x1] %vm626_vm4, %v614_v27 }
 0x199   : > { %629 = vst.msk [vmem:[#allocation2 + $0x28] sm:$0x1] %vm628_vm5, %v614_v27  ;;  %v610_v28 = vpop.permute.xlu0 %609 }
 0x19a   : > { %619 = vst.msk [vmem:[#allocation2] sm:$0xfe] %vm618_vm6, %v610_v28 }
 0x19b   : > { %621 = vst.msk [vmem:[#allocation2 + $0x8] sm:$0xfe] %vm620_vm7, %v610_v28 }
 0x19d   : > { %v612_v29 = vpop.permute.xlu0 %611 }
 0x19e   : > { %623 = vst.msk [vmem:[#allocation2 + $0x10] sm:$0xff] %vm622_vm8, %v612_v29 }
 0x19f   : > { %625 = vst.msk [vmem:[#allocation2 + $0x18] sm:$0xff] %vm624_vm9, %v612_v29  ;;  %v654_v46 = vld [vmem:[#allocation2 + $0x20] sm:$0x1] }
 0x1a0   : > { %v655_v37 = vld [vmem:[#allocation2 + $0x28] sm:$0x1]  ;;  %v688_v51 = vrot.slane %v654_v46, 1  ;;  %v855_v12 = vld [vmem:[#allocation2 + $0x20] sm:$0x3] }
 0x1a1   : > { %v630_v31 = vld [vmem:[#allocation2] sm:$0xff]  ;;  %v690_v45 = vrot.slane %v655_v37, 1  ;;  %v856_v8 = vld [vmem:[#allocation2 + $0x28] sm:$0x3]  ;;  %v887_v15 = vrot.slane %v855_v12, 2 }
 0x1a2   : > { %v631_v30 = vld [vmem:[#allocation2 + $0x8] sm:$0xff]  ;;  %v652_v33 = vld [vmem:[#allocation2] sm:$0xfe]  ;;  %v889_v11 = vrot.slane %v856_v8, 2 }
 0x1a3   : > { %1114 = vmatprep.mubr.msk.f32.mxu0 %vm596_vm2, %v631_v30  ;;  %v653_v32 = vld [vmem:[#allocation2 + $0x8] sm:$0xfe]  ;;  %v682_v41 = vrot.slane %v652_v33, 1  ;;  %v853_v6 = vld [vmem:[#allocation2] sm:$0xfc] }
 0x1a4   : > { %843 = vmatmul.mubr.f32.vlgmr.msra.gmra.mxu0 %v630_v31  ;;  %v685_v40 = vrot.slane %v653_v32, 1  ;;  %v854_v47 = vld [vmem:[#allocation2 + $0x8] sm:$0xfc]  ;;  %v881_v10 = vrot.slane %v853_v6, 2 }
 0x1a5   : > { %v1623_v36 = vld [vmem:[#allocation2 + $0x10] sm:$0xff]  ;;  %v884_v53 = vrot.slane %v854_v47, 2 }
 0x1a6   : > { %v1621_v35 = vld [vmem:[#allocation2 + $0x18] sm:$0xff]  ;;  %v683_v39 = vrot.slane %v1623_v36, 1  ;;  %v882_v7 = vrot.slane %v1623_v36, 2 }
 0x1a7   : > { %v686_v38 = vrot.slane %v1621_v35, 1  ;;  %1115 = vmatprep.mubr.msk.f32.mxu0 %vm596_vm2, %v1621_v35  ;;  %v885_v48 = vrot.slane %v1621_v35, 2 }
 0x1a8   : > { %848 = vmatmul.mubr.f32.gmra.mxu0 %v1623_v36  ;;  %v684_v43 = vsel %vm681_vm10, %v682_v41, %v683_v39  ;;  %v689_v54 = vsel %vm681_vm10, %v683_v39, %v688_v51  ;;  %v883_v13 = vsel %vm880_vm11, %v881_v10, %v882_v7  ;;  %v888_v16 = vsel %vm880_vm11, %v882_v7, %v887_v15 }
 0x1a9   : > { %v687_v42 = vsel %vm681_vm10, %v685_v40, %v686_v38  ;;  %v691_v49 = vsel %vm681_vm10, %v686_v38, %v690_v45  ;;  %v886_v55 = vsel %vm880_vm11, %v884_v53, %v885_v48  ;;  %v890_v14 = vsel %vm880_vm11, %v885_v48, %v889_v11 }
 0x1aa   : > { %1112 = vmatprep.mubr.msk.f32.mxu1 %vm596_vm2, %v687_v42 }
 0x1ab   : > { %763 = vmatmul.mubr.f32.vlgmr.msra.gmra.mxu1 %v684_v43 }
 0x1ac   : > { %898 = vmatpush1.msra.mxu1 %v873_v44  ;;  %1113 = vmatprep.mubr.msk.f32.mxu1 %vm596_vm2, %v691_v49 }
 0x1ad   : > { %899 = vmatprep.subr.mxu1 %v1413_v34 }
 0x1ae   : > { %900 = vmatpush1.msra.mxu1 %v872_v50 }
 0x1af   : > { %901 = vmatprep.subr.mxu1 %v1413_v34  ;;  %768 = vmatmul.mubr.f32.gmra.mxu1 %v689_v54 }
 0x1b0   : > { %902 = vmatpush1.msra.mxu1 %v871_v52  ;;  %1116 = vmatprep.mubr.msk.f32.mxu1 %vm596_vm2, %v886_v55 }
 0x1b1   : > { %903 = vmatprep.subr.mxu1 %v1413_v34 }
 0x1b2   : > { %904 = vmatpush1.msra.mxu1 %v870_v56 }
 0x1b3   : > { %905 = vmatprep.subr.mxu1 %v1413_v34 }
 0x1b4   : > { %906 = vmatpush1.msra.mxu1 %v869_v57 }
 0x1b5   : > { %907 = vmatprep.subr.mxu1 %v1413_v34 }
 0x1b6   : > { %908 = vmatpush1.msra.mxu1 %v868_v58 }
 0x1b7   : > { %909 = vmatprep.subr.mxu1 %v1413_v34 }
 0x1b8   : > { %910 = vmatpush1.msra.mxu1 %v867_v59 }
 0x1b9   : > { %911 = vmatprep.subr.mxu1 %v1413_v34 }
 0x1ba   : > { %912 = vmatpush1.msra.mxu1 %v866_v60 }
 0x1bb   : > { %913 = vmatprep.subr.mxu1 %v1413_v34 }
 0x1bc   : > { %914 = vmatpush1.msra.mxu1 %v865_v61 }
 0x1bd   : > { %915 = vmatprep.subr.mxu1 %v1413_v34 }
 0x1be   : > { %916 = vmatpush1.msra.mxu1 %v864_v62 }
 0x1bf   : > { %917 = vmatprep.subr.mxu1 %v1413_v34 }
 0x1c0   : > { %918 = vmatpush1.msra.mxu1 %v863_v63 }
 0x1c1   : > { %919 = vmatprep.subr.mxu1 %v1413_v34 }
 0x1c2   : > { %920 = vmatpush1.msra.mxu1 %v862_v0 }
 0x1c3   : > { %921 = vmatprep.subr.mxu1 %v1413_v34 }
 0x1c4   : > { %922 = vmatpush1.msra.mxu1 %v861_v1 }
 0x1c5   : > { %923 = vmatprep.subr.mxu1 %v1413_v34 }
 0x1c6   : > { %924 = vmatpush1.msra.mxu1 %v860_v2 }
 0x1c7   : > { %925 = vmatprep.subr.mxu1 %v1413_v34 }
 0x1c8   : > { %926 = vmatpush1.msra.mxu1 %v859_v3 }
 0x1c9   : > { %927 = vmatprep.subr.mxu1 %v1413_v34 }
 0x1ca   : > { %928 = vmatpush1.msra.mxu1 %v858_v4 }
 0x1cb   : > { %957 = vmatprep.subr.mxu1 %v1413_v34 }
 0x1cc   : > { %958 = vmatpush2.msra.mxu1 %v875_v5 }
 0x1cd   : > { %959 = vmatprep.subr.mxu1 %v1413_v34 }
 0x1ce   : > { %960 = vmatpush2.msra.mxu1 %v874_v9 }
 0x1cf   : > { %962 = vmatmul.mubr.f32.vlgmr.msra.gmra.mxu1 %v883_v13 }
 0x1d0   : > { %1117 = vmatprep.mubr.msk.f32.mxu1 %vm596_vm2, %v890_v14 }
 0x1d3   : > { %967 = vmatmul.mubr.f32.gmra.mxu1 %v888_v16 }
 0x264   : > { %v844_v17 = vpop.f32.mrf.mxu0 }
 0x266   : > { %v846_v18 = vpop.f32.mrf.mxu0 }
 0x268   : > { %v849_v34 = vpop.f32.mrf.mxu0 }
 0x26a   : > { %v851_v19 = vpop.f32.mrf.mxu0 }
 0x26b   : > { %v764_v20 = vpop.f32.mrf.mxu1 }
 0x26c   : > { %v845_v24 = vadd.f32 %v844_v17, %v764_v20 }
 0x26d   : > { %v766_v21 = vpop.f32.mrf.mxu1 }
 0x26f   : > { %v769_v22 = vpop.f32.mrf.mxu1 }
 0x270   : > { %v850_v29 = vadd.f32 %v849_v34, %v769_v22 }
 0x271   : > { %v771_v23 = vpop.f32.mrf.mxu1 }
 0x28f   : > { %v963_v25 = vpop.f32.mrf.mxu1 }
 0x290   : > { %v972_v27 = vadd.f32 %v963_v25, %v845_v24 }
 0x291   : > { %v965_v28 = vpop.f32.mrf.mxu1 }
 0x292   : > { %v981_v30 = vadd.f32 %v1118_v26, %v972_v27 }
 0x293   : > { %v968_v31 = vpop.f32.mrf.mxu1 }
 0x294   : > { %v983_v32 = vmax.f32 %v981_v30, 0.0  ;;  %v973_v33 = vadd.f32 %v968_v31, %v850_v29 }
 0x295   : > { %v970_v35 = vpop.f32.mrf.mxu1 }
 0x296   : > { %985 = vst [vmem:[%s285_s29] sm:$0xff] %v983_v32  ;;  %v982_v36 = vadd.f32 %v1118_v26, %v973_v33 }
 0x298   : > { %v984_v37 = vmax.f32 %v982_v36, 0.0 }
 0x29a   : > { %986 = vst [vmem:[%s285_s29 + $0x8] sm:$0xff] %v984_v37 }
 0x29b   : > { %1352 = shalt.err (!%p1349_p3)
}
 0x29c   : > { %s1353_s19 = scalar_lea.hbm %s1675_s13, 256  ;;  %s1357_s28 = scalar_lea.hbm %s1724_s6, 512 }
 0x29d   : > { %p1354_p2 = scmp.ne.s32.totalorder %s1675_s13, %s1353_s19  ;;  %p1358_p7 = scmp.lt.s32.totalorder %s1675_s13, %s1724_s6 }
 0x29e   : > { %p1359_p6 = scmp.lt.s32.totalorder %s1357_s28, %s1353_s19 }
 0x29f   : > { %p1355_p4 = pnand %p1354_p2, %p1490_p5 }
 0x2a0   : > { %p1360_p9 = por %p1359_p6, %p1358_p7 }
 0x2a1   : > { %p1356_p13 = pneg %p1355_p4 }
 0x2a3   : > { %p1361_p10 = pnand %p1360_p9, %p1356_p13 }
 0x2a5   : > { %1364 = shalt.err (!%p1361_p10)
}
 0x2a6   : > { %s1416_s11 = smov 128  }
 0x2a7   : > { %1230 = dma.vmem_to_hbm [thread:$0]  (%p1490_p5), %s1670_s9, 256, %s1675_s13, %s1677_s14, %s1416_s11, %s1416_s11, %s1414_s18  }
 0x2a8 PF: > { %p1247_p12 = scmp.ge.s32.totalorder %s1407_s24, 2  ;;  %s1016_s12 = sand.u32 1, %s1395_s21  }
 0x2a9   : > { %p1734_p8 = scmp.ne.s32.totalorder %s1727_s8, 0  ;;  %s1017_s15 = scalar_lea.sflag [#allocation5], %s1016_s12 }
 0x2ab   : > { %p1240_p11 = pnand %p1247_p12, %p1734_p8 }
 0x2ad   : > { %p1241_p0 = pneg %p1240_p11 }
 0x2af   : > { %1390 = dma.done.wait (%p1241_p0), %s1017_s15, 256  }
 0x2b0   : > { %1392 = vsyncadd (%p1241_p0), %s1017_s15, 4294967040  ;;  %p18_p1 = scmp.ge.s32.totalorder %s1477_s27, 4   ;;  %s1735_s21 = smov %s1399_s22 }
 0x2b1   : > { %s1736_s22 = smov %s1403_s23  ;;  %s1737_s23 = smov %s1488_s30 }
 0x2b2   : > { %s1738_s24 = smov %s1477_s27  ;;  %20 = sbr.rel (!%p18_p1) target bundleno = 5 (0x5), region = 95 }
 0x2b7   :  { %1022 = vsyncpa [#allocation4], 1 }
 0x2b8   :  { %1024 = vsyncpa [#allocation4 + $0x1], 1 }
 0x2b9   :  { %1025 = vsyncpa [#allocation7], 1 }
 0x2ba   :  { %1026 = vsyncpa [#allocation5], 1 }
 0x2bb   :  { %1028 = vsyncpa [#allocation5 + $0x1], 1 }

</bundles_post_ra>
